<compile_context>
chip_gen: v6e
topology: v6e:2x2x1
jax: 0.10.0
libtpu: 0.0.40
codegen_flags: <defaults>
</compile_context>

<pallas_src>
import functools

import jax
import jax.numpy as jnp
from jax.experimental import pallas as pl
from jax.experimental.pallas import tpu as pltpu

LANE = 128


def _round_up(x, m):
    return (x + m - 1) // m * m


def _fused_mlp_kernel(*refs, n_layers, relu_flags):
    """refs = (x_ref, w1, b1, w2, b2, ..., o_ref).

    x is bf16 (tm, in_pad); weights bf16 (in_pad_i, out_pad_i); biases f32
    (1, out_pad_i).  Whole encoder+decoder stack runs in one body; the
    intermediate activations stay in vregs/VMEM.
    """
    x_ref = refs[0]
    o_ref = refs[-1]
    wb = refs[1:-1]

    h = x_ref[...]                                        # bf16
    for i in range(n_layers):
        w_ref = wb[2 * i]
        b_ref = wb[2 * i + 1]
        y = jnp.dot(h, w_ref[...], preferred_element_type=jnp.float32)
        y = y + b_ref[...]                                # f32 bias add (broadcast)
        if relu_flags[i]:
            y = jnp.maximum(y, 0.0)
        # Re-feed the MXU in bf16 for the next layer; keep the final result f32.
        h = y.astype(jnp.bfloat16) if i < n_layers - 1 else y
    o_ref[...] = h.astype(o_ref.dtype)


def pad_and_pack_params(raw_params):
    """raw_params: list of (W (out,in) f32, b (out,) f32) in PyTorch nn.Linear layout.

    Returns list of (W^T zero-padded to (in_pad, out_pad) bf16, bias (1, out_pad) f32).
    Zero padding is exact: padded input columns are zero, padded weight rows/cols
    and bias entries are zero, and ReLU(0) = 0, so padded lanes stay exactly zero.
    """
    packed = []
    for w, b in raw_params:
        out_f, in_f = w.shape
        in_pad = _round_up(in_f, LANE)
        out_pad = _round_up(out_f, LANE)
        w_p = jnp.zeros((in_pad, out_pad), jnp.float32).at[:in_f, :out_f].set(w.T)
        b_p = jnp.zeros((1, out_pad), jnp.float32).at[0, :out_f].set(b)
        packed.append((w_p.astype(jnp.bfloat16), b_p))
    return packed


@functools.partial(jax.jit, static_argnames=("relu_flags", "out_features"))
def encoder_decoder_forward(x, packed_params, *, relu_flags, out_features):
    """x: (B, in_features) f32.  packed_params: output of pad_and_pack_params."""
    batch, in_f = x.shape
    n_layers = len(packed_params)
    in_pad = packed_params[0][0].shape[0]
    out_pad = packed_params[-1][0].shape[1]

    # Batch tiling: whole (padded) batch as one tile for small batches, 256-row
    # tiles otherwise so activation DMA pipelines while weights stay resident.
    tm = min(256, _round_up(batch, 16))
    batch_pad = _round_up(batch, tm)
    grid = (batch_pad // tm,)

    # Pad + cast the input once in the wrapper (halves activation DMA bytes).
    x_p = jnp.zeros((batch_pad, in_pad), jnp.bfloat16)
    x_p = x_p.at[:batch, :in_f].set(x.astype(jnp.bfloat16))

    act_map = lambda i: (i, 0)     # activation/output tiles march over batch
    const_map = lambda i: (0, 0)   # weights/biases: same block -> VMEM-resident

    in_specs = [pl.BlockSpec((tm, in_pad), act_map)]
    flat_args = [x_p]
    for w, b in packed_params:
        in_specs.append(pl.BlockSpec(w.shape, const_map))
        in_specs.append(pl.BlockSpec(b.shape, const_map))
        flat_args += [w, b]

    kernel = functools.partial(
        _fused_mlp_kernel, n_layers=n_layers, relu_flags=relu_flags
    )

    out = pl.pallas_call(
        kernel,
        out_shape=jax.ShapeDtypeStruct((batch_pad, out_pad), jnp.float32),
        grid_spec=pltpu.PrefetchScalarGridSpec(
            num_scalar_prefetch=0,
            grid=grid,
            in_specs=in_specs,
            out_specs=pl.BlockSpec((tm, out_pad), act_map),
        ),
        compiler_params=pltpu.CompilerParams(
            dimension_semantics=("parallel",),
            vmem_limit_bytes=32 * 1024 * 1024,
        ),
    )(*flat_args)

    # Slice away batch/lane padding in the wrapper (kernel store stays lane-dense).
    return out[:batch, :out_features]


def build_raw_params(key, layer_specs):
    """Deterministic init mirroring nn.Linear shapes: (W (out,in), b (out,))."""
    params = []
    for (in_f, out_f) in layer_specs:
        key, kw, kb = jax.random.split(key, 3)
        bound = 1.0 / jnp.sqrt(jnp.float32(in_f))
        w = jax.random.uniform(kw, (out_f, in_f), jnp.float32, -bound, bound)
        b = jax.random.uniform(kb, (out_f,), jnp.float32, -bound, bound)
        params.append((w, b))
    return params


def reference_stage(h, params):
    """Pure-JAX reference mirroring the kernel numerics (bf16 matmul, f32 acc)."""
    n = len(params)
    for i, (w, b) in enumerate(params):
        y = jnp.dot(h.astype(jnp.bfloat16), w.T.astype(jnp.bfloat16),
                    preferred_element_type=jnp.float32) + b
        h = jnp.maximum(y, 0.0) if i < n - 1 else y
    return h


if __name__ == "__main__":
    key = jax.random.PRNGKey(0)

    # Same small forward-consistent shapes as the original module usage:
    # input 32 -> 64 -> latent 16 -> 64 -> output 32.
    encoder_layers = [(32, 64), (64, 16)]
    decoder_layers = [(16, 64), (64, 32)]
    batch = 8
    in_features = encoder_layers[0][0]
    out_features = decoder_layers[-1][1]

    key, kx, ke, kd = jax.random.split(key, 4)
    x = jax.random.normal(kx, (batch, in_features), jnp.float32)
    enc_raw = build_raw_params(ke, encoder_layers)
    dec_raw = build_raw_params(kd, decoder_layers)

    # ReLU after every layer except the last of each stage (Sequential[:-1]).
    relu_flags = tuple(
        [i < len(encoder_layers) - 1 for i in range(len(encoder_layers))]
        + [i < len(decoder_layers) - 1 for i in range(len(decoder_layers))]
    )
    packed = pad_and_pack_params(enc_raw + dec_raw)

    out = encoder_decoder_forward(
        x, packed, relu_flags=relu_flags, out_features=out_features
    )
    out = jax.block_until_ready(out)

    ref = reference_stage(reference_stage(x, enc_raw), dec_raw)

    assert out.shape == (batch, out_features)
    assert jnp.allclose(out, ref, atol=1e-3, rtol=1e-3), float(
        jnp.max(jnp.abs(out - ref))
    )

    print("KERNEL_OK")
</pallas_src>

<mosaic_0001>
module attributes {stable_mosaic.version = 11 : i64} {
  func.func @_fused_mlp_kernel(%arg0: i32, %arg1: memref<16x128xbf16, #tpu.memory_space<vmem>>, %arg2: memref<128x128xbf16, #tpu.memory_space<vmem>>, %arg3: memref<1x128xf32, #tpu.memory_space<vmem>>, %arg4: memref<128x128xbf16, #tpu.memory_space<vmem>>, %arg5: memref<1x128xf32, #tpu.memory_space<vmem>>, %arg6: memref<128x128xbf16, #tpu.memory_space<vmem>>, %arg7: memref<1x128xf32, #tpu.memory_space<vmem>>, %arg8: memref<128x128xbf16, #tpu.memory_space<vmem>>, %arg9: memref<1x128xf32, #tpu.memory_space<vmem>>, %arg10: memref<16x128xf32, #tpu.memory_space<vmem>>) attributes {dimension_semantics = [#tpu.dimension_semantics<parallel>], iteration_bounds = array<i64: 1>, scalar_prefetch = 0 : i64, scratch_operands = 0 : i64, tpu.core_type = #tpu.core_type<tc>, window_params = [{transform_indices = @transform_0, window_bounds = array<i64: 16, 128>}, {pipeline_mode = #tpu.pipeline_mode<synchronous>, transform_indices = @transform_1, window_bounds = array<i64: 128, 128>}, {pipeline_mode = #tpu.pipeline_mode<synchronous>, transform_indices = @transform_2, window_bounds = array<i64: 1, 128>}, {pipeline_mode = #tpu.pipeline_mode<synchronous>, transform_indices = @transform_3, window_bounds = array<i64: 128, 128>}, {pipeline_mode = #tpu.pipeline_mode<synchronous>, transform_indices = @transform_4, window_bounds = array<i64: 1, 128>}, {pipeline_mode = #tpu.pipeline_mode<synchronous>, transform_indices = @transform_5, window_bounds = array<i64: 128, 128>}, {pipeline_mode = #tpu.pipeline_mode<synchronous>, transform_indices = @transform_6, window_bounds = array<i64: 1, 128>}, {pipeline_mode = #tpu.pipeline_mode<synchronous>, transform_indices = @transform_7, window_bounds = array<i64: 128, 128>}, {pipeline_mode = #tpu.pipeline_mode<synchronous>, transform_indices = @transform_8, window_bounds = array<i64: 1, 128>}, {transform_indices = @transform_9, window_bounds = array<i64: 16, 128>}]} {
    %c0 = arith.constant 0 : index
    %c0_0 = arith.constant 0 : index
    %0 = vector.load %arg1[%c0, %c0_0] : memref<16x128xbf16, #tpu.memory_space<vmem>>, vector<16x128xbf16>
    %c0_1 = arith.constant 0 : index
    %c0_2 = arith.constant 0 : index
    %1 = vector.load %arg2[%c0_1, %c0_2] : memref<128x128xbf16, #tpu.memory_space<vmem>>, vector<128x128xbf16>
    %cst = arith.constant dense<0.000000e+00> : vector<16x128xf32>
    %2 = tpu.matmul %0, %1, %cst {dimension_numbers = #tpu.dot_dimension_numbers<[1], [0], [0], [1], [0, 0, 1, 1], [], []>} : vector<16x128xbf16>, vector<128x128xbf16>, vector<16x128xf32> -> vector<16x128xf32>
    %c0_3 = arith.constant 0 : index
    %c0_4 = arith.constant 0 : index
    %3 = vector.load %arg3[%c0_3, %c0_4] : memref<1x128xf32, #tpu.memory_space<vmem>>, vector<1x128xf32>
    %4 = vector.broadcast %3 : vector<1x128xf32> to vector<16x128xf32>
    %5 = arith.addf %2, %4 : vector<16x128xf32>
    %cst_5 = arith.constant 0.000000e+00 : f32
    %6 = vector.broadcast %cst_5 : f32 to vector<16x128xf32>
    %7 = arith.maximumf %5, %6 : vector<16x128xf32>
    %8 = arith.truncf %7 : vector<16x128xf32> to vector<16x128xbf16>
    %c0_6 = arith.constant 0 : index
    %c0_7 = arith.constant 0 : index
    %9 = vector.load %arg4[%c0_6, %c0_7] : memref<128x128xbf16, #tpu.memory_space<vmem>>, vector<128x128xbf16>
    %cst_8 = arith.constant dense<0.000000e+00> : vector<16x128xf32>
    %10 = tpu.matmul %8, %9, %cst_8 {dimension_numbers = #tpu.dot_dimension_numbers<[1], [0], [0], [1], [0, 0, 1, 1], [], []>} : vector<16x128xbf16>, vector<128x128xbf16>, vector<16x128xf32> -> vector<16x128xf32>
    %c0_9 = arith.constant 0 : index
    %c0_10 = arith.constant 0 : index
    %11 = vector.load %arg5[%c0_9, %c0_10] : memref<1x128xf32, #tpu.memory_space<vmem>>, vector<1x128xf32>
    %12 = vector.broadcast %11 : vector<1x128xf32> to vector<16x128xf32>
    %13 = arith.addf %10, %12 : vector<16x128xf32>
    %14 = arith.truncf %13 : vector<16x128xf32> to vector<16x128xbf16>
    %c0_11 = arith.constant 0 : index
    %c0_12 = arith.constant 0 : index
    %15 = vector.load %arg6[%c0_11, %c0_12] : memref<128x128xbf16, #tpu.memory_space<vmem>>, vector<128x128xbf16>
    %cst_13 = arith.constant dense<0.000000e+00> : vector<16x128xf32>
    %16 = tpu.matmul %14, %15, %cst_13 {dimension_numbers = #tpu.dot_dimension_numbers<[1], [0], [0], [1], [0, 0, 1, 1], [], []>} : vector<16x128xbf16>, vector<128x128xbf16>, vector<16x128xf32> -> vector<16x128xf32>
    %c0_14 = arith.constant 0 : index
    %c0_15 = arith.constant 0 : index
    %17 = vector.load %arg7[%c0_14, %c0_15] : memref<1x128xf32, #tpu.memory_space<vmem>>, vector<1x128xf32>
    %18 = vector.broadcast %17 : vector<1x128xf32> to vector<16x128xf32>
    %19 = arith.addf %16, %18 : vector<16x128xf32>
    %cst_16 = arith.constant 0.000000e+00 : f32
    %20 = vector.broadcast %cst_16 : f32 to vector<16x128xf32>
    %21 = arith.maximumf %19, %20 : vector<16x128xf32>
    %22 = arith.truncf %21 : vector<16x128xf32> to vector<16x128xbf16>
    %c0_17 = arith.constant 0 : index
    %c0_18 = arith.constant 0 : index
    %23 = vector.load %arg8[%c0_17, %c0_18] : memref<128x128xbf16, #tpu.memory_space<vmem>>, vector<128x128xbf16>
    %cst_19 = arith.constant dense<0.000000e+00> : vector<16x128xf32>
    %24 = tpu.matmul %22, %23, %cst_19 {dimension_numbers = #tpu.dot_dimension_numbers<[1], [0], [0], [1], [0, 0, 1, 1], [], []>} : vector<16x128xbf16>, vector<128x128xbf16>, vector<16x128xf32> -> vector<16x128xf32>
    %c0_20 = arith.constant 0 : index
    %c0_21 = arith.constant 0 : index
    %25 = vector.load %arg9[%c0_20, %c0_21] : memref<1x128xf32, #tpu.memory_space<vmem>>, vector<1x128xf32>
    %26 = vector.broadcast %25 : vector<1x128xf32> to vector<16x128xf32>
    %27 = arith.addf %24, %26 : vector<16x128xf32>
    %c0_22 = arith.constant 0 : index
    %c0_23 = arith.constant 0 : index
    %28 = vector.load %arg10[%c0_22, %c0_23] : memref<16x128xf32, #tpu.memory_space<vmem>>, vector<16x128xf32>
    tpu.vector_store %arg10[%c0_22, %c0_23], %27 {strides = array<i32>} : memref<16x128xf32, #tpu.memory_space<vmem>>, vector<16x128xf32>,
    return
  }
  func.func @transform_0(%arg0: i32) -> (i32, i32) {
    %c0_i32 = arith.constant 0 : i32
    %c0_i32_0 = arith.constant 0 : i32
    return %arg0, %c0_i32 : i32, i32
  }
  func.func @transform_1(%arg0: i32) -> (i32, i32) {
    %c0_i32 = arith.constant 0 : i32
    %c0_i32_0 = arith.constant 0 : i32
    %c0_i32_1 = arith.constant 0 : i32
    return %c0_i32, %c0_i32_0 : i32, i32
  }
  func.func @transform_2(%arg0: i32) -> (i32, i32) {
    %c0_i32 = arith.constant 0 : i32
    %c0_i32_0 = arith.constant 0 : i32
    %c0_i32_1 = arith.constant 0 : i32
    return %c0_i32, %c0_i32_0 : i32, i32
  }
  func.func @transform_3(%arg0: i32) -> (i32, i32) {
    %c0_i32 = arith.constant 0 : i32
    %c0_i32_0 = arith.constant 0 : i32
    %c0_i32_1 = arith.constant 0 : i32
    return %c0_i32, %c0_i32_0 : i32, i32
  }
  func.func @transform_4(%arg0: i32) -> (i32, i32) {
    %c0_i32 = arith.constant 0 : i32
    %c0_i32_0 = arith.constant 0 : i32
    %c0_i32_1 = arith.constant 0 : i32
    return %c0_i32, %c0_i32_0 : i32, i32
  }
  func.func @transform_5(%arg0: i32) -> (i32, i32) {
    %c0_i32 = arith.constant 0 : i32
    %c0_i32_0 = arith.constant 0 : i32
    %c0_i32_1 = arith.constant 0 : i32
    return %c0_i32, %c0_i32_0 : i32, i32
  }
  func.func @transform_6(%arg0: i32) -> (i32, i32) {
    %c0_i32 = arith.constant 0 : i32
    %c0_i32_0 = arith.constant 0 : i32
    %c0_i32_1 = arith.constant 0 : i32
    return %c0_i32, %c0_i32_0 : i32, i32
  }
  func.func @transform_7(%arg0: i32) -> (i32, i32) {
    %c0_i32 = arith.constant 0 : i32
    %c0_i32_0 = arith.constant 0 : i32
    %c0_i32_1 = arith.constant 0 : i32
    return %c0_i32, %c0_i32_0 : i32, i32
  }
  func.func @transform_8(%arg0: i32) -> (i32, i32) {
    %c0_i32 = arith.constant 0 : i32
    %c0_i32_0 = arith.constant 0 : i32
    %c0_i32_1 = arith.constant 0 : i32
    return %c0_i32, %c0_i32_0 : i32, i32
  }
  func.func @transform_9(%arg0: i32) -> (i32, i32) {
    %c0_i32 = arith.constant 0 : i32
    %c0_i32_0 = arith.constant 0 : i32
    return %arg0, %c0_i32 : i32, i32
  }
}

</mosaic_0001>

<bundles_post_ra>
// kernel: encoder_decoder_forward.1
= control target key start
LH: loop header
LB: loop body
LE: loop exit
PB: predicated region body
PF: predicated region fallthrough
CT: control target
= control target key end

     0   :  { %14 = vsyncpa [#allocation3], 0  ;;  %s983_s0 = inlined_call_operand.vmem [shape: bf16[16,128], index: 0, kind: input, shape index: {}]   ;;  %s984_s1 = inlined_call_operand.hbm [shape: bf16[128,128], index: 1, kind: input, shape index: {}]   ;;  %s985_s2 = inlined_call_operand.vmem [shape: f32[1,128], index: 2, kind: input, shape index: {}]   ;;  %s986_s3 = inlined_call_operand.hbm [shape: bf16[128,128], index: 3, kind: input, shape index: {}]   ;;  %s987_s4 = inlined_call_operand.vmem [shape: f32[1,128], index: 4, kind: input, shape index: {}]   ;;  %s988_s5 = inlined_call_operand.hbm [shape: bf16[128,128], index: 5, kind: input, shape index: {}]   ;;  %s989_s6 = inlined_call_operand.vmem [shape: f32[1,128], index: 6, kind: input, shape index: {}]   ;;  %s990_s7 = inlined_call_operand.hbm [shape: bf16[128,128], index: 7, kind: input, shape index: {}]   ;;  %s991_s8 = inlined_call_operand.vmem [shape: f32[1,128], index: 8, kind: input, shape index: {}]   ;;  %s992_s9 = inlined_call_operand.vmem [shape: f32[16,128], index: 9, kind: output, shape index: {}]  }
   0x1   :  { %15 = vsyncpa [#allocation5], 0 }
   0x2   :  { %16 = vsyncpa [#allocation8], 0  ;;  %s840_s30 = smov [#allocation4]   ;;  %s841_s11 = smov [#allocation2]  }
   0x3   :  { %s38_s10 = sshll.u32 %s840_s30, 4  ;;  %s24_s12 = sshll.u32 %s841_s11, 4  ;;  %s39_s10 = int_to_ptr.vmem [resolvable:$true] %s38_s10  ;;  %s25_s12 = int_to_ptr.vmem [resolvable:$true] %s24_s12 }
   0x4   :  { %s762_s13 = scalar_lea.vmem %s39_s10, 1024  ;;  %p767_p1 = scmp.lt.s32.totalorder %s39_s10, %s39_s10 }
   0x5   :  { %p763_p0 = scmp.ne.s32.totalorder %s39_s10, %s762_s13  ;;  %p768_p2 = scmp.lt.s32.totalorder %s762_s13, %s762_s13 }
   0x7   :  { %p769_p3 = por %p768_p2, %p767_p1 }
   0x9   :  { %p770_p4 = pnand %p769_p3, %p763_p0 }
   0xb   :  { %773 = shalt.err (!%p770_p4)
}
   0xc   :  { %s842_s14 = smov 64   ;;  %s843_s15 = smov 4  }
   0xd   :  { %44 = dma.hbm_to_vmem [thread:$0]  %s986_s3, 1024, %s39_s10, [#allocation5], %s842_s14, %s842_s14, %s843_s15  }
   0xe   :  { %s782_s18 = scalar_lea.vmem %s25_s12, 1024  ;;  %p787_p6 = scmp.lt.s32.totalorder %s25_s12, %s25_s12 }
   0xf   :  { %p783_p5 = scmp.ne.s32.totalorder %s25_s12, %s782_s18  ;;  %p788_p7 = scmp.lt.s32.totalorder %s782_s18, %s782_s18 }
  0x11   :  { %p789_p8 = por %p788_p7, %p787_p6 }
  0x13   :  { %p790_p9 = pnand %p789_p8, %p783_p5 }
  0x15   :  { %793 = shalt.err (!%p790_p9)
}
  0x16   :  { %30 = dma.hbm_to_vmem [thread:$0]  %s984_s1, 1024, %s25_s12, [#allocation3], %s842_s14, %s842_s14, %s843_s15  }
  0x17   :  { %s844_s21 = smov [#allocation6]   ;;  %s845_s23 = smov [#allocation7]  }
  0x18   :  { %s52_s22 = sshll.u32 %s844_s21, 4  ;;  %s66_s24 = sshll.u32 %s845_s23, 4  ;;  %s53_s22 = int_to_ptr.vmem [resolvable:$true] %s52_s22  ;;  %s67_s24 = int_to_ptr.vmem [resolvable:$true] %s66_s24 }
  0x19   :  { %s802_s3 = scalar_lea.vmem %s53_s22, 1024  ;;  %p807_p11 = scmp.lt.s32.totalorder %s53_s22, %s53_s22 }
  0x1a   :  { %p803_p10 = scmp.ne.s32.totalorder %s53_s22, %s802_s3  ;;  %p808_p12 = scmp.lt.s32.totalorder %s802_s3, %s802_s3 }
  0x1c   :  { %p809_p13 = por %p808_p12, %p807_p11 }
  0x1e   :  { %p810_p0 = pnand %p809_p13, %p803_p10 }
  0x20   :  { %813 = shalt.err (!%p810_p0)
}
  0x21   :  { %58 = dma.hbm_to_vmem [thread:$0]  %s988_s5, 1024, %s53_s22, [#allocation5], %s842_s14, %s842_s14, %s843_s15  }
  0x22   :  { %s822_s1 = scalar_lea.vmem %s67_s24, 1024  ;;  %p827_p2 = scmp.lt.s32.totalorder %s67_s24, %s67_s24 }
  0x23   :  { %p823_p1 = scmp.ne.s32.totalorder %s67_s24, %s822_s1  ;;  %p828_p3 = scmp.lt.s32.totalorder %s822_s1, %s822_s1 }
  0x25   :  { %p829_p4 = por %p828_p3, %p827_p2 }
  0x27   :  { %p830_p5 = pnand %p829_p4, %p823_p1 }
  0x29   :  { %833 = shalt.err (!%p830_p5)
}
  0x2a   :  { %72 = dma.hbm_to_vmem [thread:$0]  %s990_s7, 1024, %s67_s24, [#allocation8], %s842_s14, %s842_s14, %s843_s15  }
  0x2b   :  { %834 = dma.done.wait [#allocation3], 1024  }
  0x2c   :  { %835 = vsyncadd [#allocation3], 4294966272 }
  0x2d   :  { %836 = dma.done.wait [#allocation5], 2048  }
  0x2e   :  { %837 = vsyncadd [#allocation5], 4294965248 }
  0x2f   :  { %838 = dma.done.wait [#allocation8], 1024  }
  0x30   :  { %839 = vsyncadd [#allocation8], 4294966272  ;;  %v846_v0 = vmov 0.0   ;;  %vm847_vm0 = vmmov 0   ;;  %v721_v1 = vld [vmem:[#allocation2 + $0x38] sm:$0xff]   ;;  %v722_v2 = vld [vmem:[#allocation2 + $0x30] sm:$0xff]  }
  0x31   :  { %633 = vmatprep.subr.bf16.mxu0 %v846_v0  ;;  %649 = vmatprep.mubr.msk.bf16.mxu0 %vm847_vm0, %v846_v0  ;;  %v723_v3 = vld [vmem:[#allocation2 + $0x28] sm:$0xff]   ;;  %v730_v4 = vld [vmem:[#allocation4 + $0x38] sm:$0xff]   ;;  %v724_v5 = vld [vmem:[#allocation2 + $0x20] sm:$0xff]  }
  0x32   :  { %653 = vmatprep.subr.bf16.mxu1 %v846_v0  ;;  %669 = vmatprep.mubr.msk.bf16.mxu1 %vm847_vm0, %v846_v0  ;;  %v731_v6 = vld [vmem:[#allocation4 + $0x30] sm:$0xff]   ;;  %v725_v7 = vld [vmem:[#allocation2 + $0x18] sm:$0xff]   ;;  %v732_v8 = vld [vmem:[#allocation4 + $0x28] sm:$0xff]  }
  0x33   :  { %634 = vmatpush3.bf16.msra.mxu0 %v721_v1  ;;  %654 = vmatpush3.bf16.msra.mxu1 %v730_v4  ;;  %v726_v9 = vld [vmem:[#allocation2 + $0x10] sm:$0xff]   ;;  %v733_v10 = vld [vmem:[#allocation4 + $0x20] sm:$0xff]   ;;  %v727_v11 = vld [vmem:[#allocation2 + $0x8] sm:$0xff]  }
  0x34   :  { %635 = vmatprep.subr.bf16.mxu0 %v846_v0  ;;  %655 = vmatprep.subr.bf16.mxu1 %v846_v0  ;;  %v734_v12 = vld [vmem:[#allocation4 + $0x18] sm:$0xff]   ;;  %v728_v13 = vld [vmem:[#allocation2] sm:$0xff]   ;;  %v735_v15 = vld [vmem:[#allocation4 + $0x10] sm:$0xff]  }
  0x35   :  { %v729_v14 = vld [vmem:[%s983_s0] sm:$0xff]   ;;  %v736_v16 = vld [vmem:[#allocation4 + $0x8] sm:$0xff]   ;;  %v738_v18 = vld [vmem:[#allocation6 + $0x38] sm:$0xff]  }
  0x36   :  { %v737_v17 = vld [vmem:[#allocation4] sm:$0xff]   ;;  %v739_v19 = vld [vmem:[#allocation6 + $0x30] sm:$0xff]   ;;  %v740_v20 = vld [vmem:[#allocation6 + $0x28] sm:$0xff]  }
  0x37   :  { %636 = vmatpush3.bf16.msra.mxu0 %v722_v2  ;;  %656 = vmatpush3.bf16.msra.mxu1 %v731_v6  ;;  %v741_v21 = vld [vmem:[#allocation6 + $0x20] sm:$0xff]   ;;  %v742_v22 = vld [vmem:[#allocation6 + $0x18] sm:$0xff]   ;;  %v743_v23 = vld [vmem:[#allocation6 + $0x10] sm:$0xff]  }
  0x38   :  { %637 = vmatprep.subr.bf16.mxu0 %v846_v0  ;;  %657 = vmatprep.subr.bf16.mxu1 %v846_v0  ;;  %v560_v24 = vld [vmem:[%s985_s2] ss:$0 sm:$0xff]  ;;  %v744_v34 = vld [vmem:[#allocation6 + $0x8] sm:$0xff]   ;;  %v746_v36 = vld [vmem:[#allocation7 + $0x38] sm:$0xff]  }
  0x39   :  { %v745_v35 = vld [vmem:[#allocation6] sm:$0xff]   ;;  %v747_v37 = vld [vmem:[#allocation7 + $0x30] sm:$0xff]   ;;  %v748_v38 = vld [vmem:[#allocation7 + $0x28] sm:$0xff]  }
  0x3a   :  { %v749_v39 = vld [vmem:[#allocation7 + $0x20] sm:$0xff]   ;;  %v750_v40 = vld [vmem:[#allocation7 + $0x18] sm:$0xff]   ;;  %v751_v49 = vld [vmem:[#allocation7 + $0x10] sm:$0xff]  }
  0x3b   :  { %638 = vmatpush3.bf16.msra.mxu0 %v723_v3  ;;  %658 = vmatpush3.bf16.msra.mxu1 %v732_v8  ;;  %v570_v42 = vld [vmem:[%s987_s4] ss:$0 sm:$0xff]  ;;  %v752_v50 = vld [vmem:[#allocation7 + $0x8] sm:$0xff]  }
  0x3c   :  { %639 = vmatprep.subr.bf16.mxu0 %v846_v0  ;;  %659 = vmatprep.subr.bf16.mxu1 %v846_v0  ;;  %v753_v51 = vld [vmem:[#allocation7] sm:$0xff]  }
  0x3d   :  { %v579_v52 = vld [vmem:[%s989_s6] ss:$0 sm:$0xff] }
  0x3e   :  { %v588_v62 = vld [vmem:[%s991_s8] ss:$0 sm:$0xff] }
  0x3f   :  { %640 = vmatpush3.bf16.msra.mxu0 %v724_v5  ;;  %660 = vmatpush3.bf16.msra.mxu1 %v733_v10 }
  0x40   :  { %641 = vmatprep.subr.bf16.mxu0 %v846_v0  ;;  %661 = vmatprep.subr.bf16.mxu1 %v846_v0 }
  0x43   :  { %642 = vmatpush3.bf16.msra.mxu0 %v725_v7  ;;  %662 = vmatpush3.bf16.msra.mxu1 %v734_v12 }
  0x44   :  { %643 = vmatprep.subr.bf16.mxu0 %v846_v0  ;;  %663 = vmatprep.subr.bf16.mxu1 %v846_v0 }
  0x47   :  { %644 = vmatpush3.bf16.msra.mxu0 %v726_v9  ;;  %664 = vmatpush3.bf16.msra.mxu1 %v735_v15 }
  0x48   :  { %645 = vmatprep.subr.bf16.mxu0 %v846_v0  ;;  %665 = vmatprep.subr.bf16.mxu1 %v846_v0 }
  0x4b   :  { %646 = vmatpush3.bf16.msra.mxu0 %v727_v11  ;;  %666 = vmatpush3.bf16.msra.mxu1 %v736_v16 }
  0x4c   :  { %647 = vmatprep.subr.bf16.mxu0 %v846_v0  ;;  %667 = vmatprep.subr.bf16.mxu1 %v846_v0 }
  0x4f   :  { %648 = vmatpush3.bf16.msra.mxu0 %v728_v13  ;;  %668 = vmatpush3.bf16.msra.mxu1 %v737_v17 }
  0x50   :  { %673 = vmatprep.subr.bf16.mxu0 %v846_v0  ;;  %693 = vmatprep.subr.bf16.mxu1 %v846_v0 }
  0x52   :  { %650 = vmatmul.mubr.bf16.vlgmr.msra.gmra.mxu0 %v729_v14 }
  0x53   :  { %689 = vmatprep.mubr.msk.bf16.mxu0 %vm847_vm0, %v846_v0  ;;  %674 = vmatpush3.bf16.msra.mxu0 %v738_v18 }
  0x54   :  { %675 = vmatprep.subr.bf16.mxu0 %v846_v0 }
  0x57   :  { %676 = vmatpush3.bf16.msra.mxu0 %v739_v19 }
  0x58   :  { %677 = vmatprep.subr.bf16.mxu0 %v846_v0 }
  0x5b   :  { %678 = vmatpush3.bf16.msra.mxu0 %v740_v20 }
  0x5c   :  { %679 = vmatprep.subr.bf16.mxu0 %v846_v0 }
  0x5f   :  { %680 = vmatpush3.bf16.msra.mxu0 %v741_v21 }
  0x60   :  { %681 = vmatprep.subr.bf16.mxu0 %v846_v0 }
  0x63   :  { %682 = vmatpush3.bf16.msra.mxu0 %v742_v22 }
  0x64   :  { %683 = vmatprep.subr.bf16.mxu0 %v846_v0 }
  0x67   :  { %684 = vmatpush3.bf16.msra.mxu0 %v743_v23 }
  0x68   :  { %685 = vmatprep.subr.bf16.mxu0 %v846_v0 }
  0x6b   :  { %686 = vmatpush3.bf16.msra.mxu0 %v744_v34 }
  0x6c   :  { %687 = vmatprep.subr.bf16.mxu0 %v846_v0 }
  0x6f   :  { %688 = vmatpush3.bf16.msra.mxu0 %v745_v35 }
 0x112   :  { %v201_v25 = vpop.f32.mrf.mxu0 }
 0x113   :  { %v202_v27 = vadd.f32 %v560_v24, %v201_v25 }
 0x114   :  { %v651_v26 = vpop.f32.mrf.mxu0 }
 0x115   :  { %v208_v31 = vmax.f32 %v202_v27, 0.0 }
 0x116   :  { %v204_v28 = vpop.f32.mrf.mxu0 }
 0x117   :  { %v205_v29 = vadd.f32 %v560_v24, %v204_v28 }
 0x118   :  { %v652_v30 = vpop.f32.mrf.mxu0 }
 0x119   :  { %v209_v32 = vmax.f32 %v205_v29, 0.0 }
 0x11b   :  { %v210_v33 = vpack.c.bf16 %v209_v32, %v208_v31 }
 0x11d   :  { %670 = vmatmul.mubr.bf16.vlgmr.msra.gmra.mxu1 %v210_v33 }
 0x11e   :  { %709 = vmatprep.mubr.msk.bf16.mxu1 %vm847_vm0, %v846_v0  ;;  %694 = vmatpush3.bf16.msra.mxu1 %v746_v36 }
 0x11f   :  { %695 = vmatprep.subr.bf16.mxu1 %v846_v0 }
 0x122   :  { %696 = vmatpush3.bf16.msra.mxu1 %v747_v37 }
 0x123   :  { %697 = vmatprep.subr.bf16.mxu1 %v846_v0 }
 0x126   :  { %698 = vmatpush3.bf16.msra.mxu1 %v748_v38 }
 0x127   :  { %699 = vmatprep.subr.bf16.mxu1 %v846_v0 }
 0x12a   :  { %700 = vmatpush3.bf16.msra.mxu1 %v749_v39 }
 0x12b   :  { %701 = vmatprep.subr.bf16.mxu1 %v846_v0 }
 0x12e   :  { %702 = vmatpush3.bf16.msra.mxu1 %v750_v40 }
 0x12f   :  { %703 = vmatprep.subr.bf16.mxu1 %v846_v0 }
 0x132   :  { %704 = vmatpush3.bf16.msra.mxu1 %v751_v49 }
 0x133   :  { %705 = vmatprep.subr.bf16.mxu1 %v846_v0 }
 0x136   :  { %706 = vmatpush3.bf16.msra.mxu1 %v752_v50 }
 0x137   :  { %707 = vmatprep.subr.bf16.mxu1 %v846_v0 }
 0x13a   :  { %708 = vmatpush3.bf16.msra.mxu1 %v753_v51 }
 0x1dd   :  { %v316_v41 = vpop.f32.mrf.mxu1 }
 0x1de   :  { %v317_v45 = vadd.f32 %v570_v42, %v316_v41 }
 0x1df   :  { %v671_v43 = vpop.f32.mrf.mxu1 }
 0x1e1   :  { %v319_v44 = vpop.f32.mrf.mxu1 }
 0x1e2   :  { %v320_v46 = vadd.f32 %v570_v42, %v319_v44 }
 0x1e3   :  { %v672_v47 = vpop.f32.mrf.mxu1 }
 0x1e4   :  { %v323_v48 = vpack.c.bf16 %v320_v46, %v317_v45 }
 0x1e6   :  { %690 = vmatmul.mubr.bf16.vlgmr.msra.gmra.mxu0 %v323_v48 }
 0x2a6   :  { %v429_v53 = vpop.f32.mrf.mxu0 }
 0x2a7   :  { %v430_v55 = vadd.f32 %v579_v52, %v429_v53 }
 0x2a8   :  { %v691_v54 = vpop.f32.mrf.mxu0 }
 0x2a9   :  { %v436_v59 = vmax.f32 %v430_v55, 0.0 }
 0x2aa   :  { %v432_v56 = vpop.f32.mrf.mxu0 }
 0x2ab   :  { %v433_v57 = vadd.f32 %v579_v52, %v432_v56 }
 0x2ac   :  { %v692_v58 = vpop.f32.mrf.mxu0 }
 0x2ad   :  { %v437_v60 = vmax.f32 %v433_v57, 0.0 }
 0x2af   :  { %v438_v61 = vpack.c.bf16 %v437_v60, %v436_v59 }
 0x2b1   :  { %710 = vmatmul.mubr.bf16.vlgmr.msra.gmra.mxu1 %v438_v61 }
 0x371   :  { %v544_v63 = vpop.f32.mrf.mxu1 }
 0x372   :  { %v545_v0 = vadd.f32 %v588_v62, %v544_v63 }
 0x373   :  { %v711_v1 = vpop.f32.mrf.mxu1 }
 0x374   :  { %551 = vst [vmem:[%s992_s9] sm:$0xff] %v545_v0 }
 0x375   :  { %v547_v2 = vpop.f32.mrf.mxu1 }
 0x376   :  { %v548_v3 = vadd.f32 %v588_v62, %v547_v2 }
 0x377   :  { %v712_v4 = vpop.f32.mrf.mxu1 }
 0x378   :  { %552 = vst [vmem:[%s992_s9 + $0x8] sm:$0xff] %v548_v3 }
 0x379   :  { %557 = vsyncpa [#allocation3], 1 }
 0x37a   :  { %558 = vsyncpa [#allocation5], 1 }
 0x37b   :  { %559 = vsyncpa [#allocation8], 1 }

</bundles_post_ra>
